<compile_context>
chip_gen: v6e
topology: v6e:2x2x1
jax: 0.10.0
libtpu: 0.0.40
codegen_flags: <defaults>
</compile_context>

<pallas_src>
import jax
import jax.numpy as jnp
from jax.experimental import pallas as pl
from jax.experimental.pallas import tpu as pltpu


def _dot_attn_kernel(dec_ref, enc_ref, out_ref, m_sc, l_sc, acc_sc):
    # dec_ref: (1, BB, H)    decoder hidden for this batch block
    # enc_ref: (ST, BB, H)   encoder outputs for this (seq tile, batch block)
    # out_ref: (1, BB, H)    context vectors (written at the last seq step)
    # m_sc, l_sc: (1, BB, 1) f32 online-softmax running max / denominator
    # acc_sc:   (1, BB, H)   f32 running (unnormalized) context accumulator
    s_step = pl.program_id(1)

    @pl.when(s_step == 0)
    def _init():
        m_sc[...] = jnp.full_like(m_sc, -jnp.inf)
        l_sc[...] = jnp.zeros_like(l_sc)
        acc_sc[...] = jnp.zeros_like(acc_sc)

    dec = dec_ref[...].astype(jnp.float32)                      # (1, BB, H)

    # scores[s, b] = sum_h enc[s, b, h] * dec[0, b, h]
    # keepdims keeps BB in the sublane dim -> no lane<->sublane shuffle for
    # the softmax or the p * enc broadcast below.  Cast fused per use; the
    # f32 encoder copy is never kept live across both contractions.
    scores = jnp.sum(enc_ref[...].astype(jnp.float32) * dec,
                     axis=2, keepdims=True)                     # (ST, BB, 1)

    # Online softmax over the sequence axis (axis 0).
    m_prev = m_sc[...]                                          # (1, BB, 1)
    m_new = jnp.maximum(m_prev, jnp.max(scores, axis=0, keepdims=True))
    alpha = jnp.exp(m_prev - m_new)                             # (1, BB, 1)
    p = jnp.exp(scores - m_new)                                 # (ST, BB, 1)

    l_sc[...] = alpha * l_sc[...] + jnp.sum(p, axis=0, keepdims=True)
    # Re-read the encoder block (cast fused into the product) for the context
    # contraction instead of reusing a materialized f32 slab.
    acc_sc[...] = alpha * acc_sc[...] + jnp.sum(
        p * enc_ref[...].astype(jnp.float32), axis=0, keepdims=True)
    m_sc[...] = m_new

    @pl.when(s_step == pl.num_programs(1) - 1)
    def _finalize():
        # Exact division: the denominator is only (1, BB, 1) elements, the
        # approximate EUP reciprocal buys nothing here.
        out_ref[...] = (acc_sc[...] / l_sc[...]).astype(out_ref.dtype)


def _vmem_limit_bytes():
    """~3/4 of physical VMEM (48 MiB on v7x, ~96 MiB on v5e/v6e), capped."""
    cap = 64 * 1024 * 1024  # conservative fallback: v7x per-TC physical VMEM
    try:
        info = pltpu.get_tpu_info()
        cap = int(getattr(info, "vmem_capacity_bytes", cap))
    except Exception:
        pass
    return min((cap * 3) // 4, 100 * 1024 * 1024)


def _pick_batch_block(B):
    """Batch block: (8,128)-legal and, when B >= 16, at most B // 2 so the
    'parallel' grid axis has >= 2 steps (keeps both v7x TensorCores busy)."""
    if B <= 8:
        return B                       # block == full dim is always legal
    cap = max(8, B // 2)
    best = None
    for bb in range(8, cap + 1, 8):    # multiples of 8 that divide B
        if B % bb == 0:
            best = bb
    if best is not None:
        return best
    return B                           # B not a multiple of 8: full batch


def _pick_seq_tile(S, BB, H, itemsize, target_block_bytes):
    """Largest divisor of S whose (ST, BB, H) block fits the target bytes."""
    row_bytes = max(1, BB * H * itemsize)
    max_st = max(1, target_block_bytes // row_bytes)
    if max_st >= S:
        return S
    for st in range(int(max_st), 0, -1):
        if S % st == 0:
            return st
    return 1


def dot_attn(decoder_hidden, encoder_outputs):
    """decoder_hidden: (1, B, H), encoder_outputs: (S, B, H) -> (1, B, H)."""
    S, B, H = encoder_outputs.shape
    assert decoder_hidden.shape == (1, B, H), "Dot_Attn expects Td == 1"

    out_dtype = jnp.result_type(decoder_hidden.dtype, encoder_outputs.dtype)
    enc_itemsize = jnp.dtype(encoder_outputs.dtype).itemsize
    dec_itemsize = jnp.dtype(decoder_hidden.dtype).itemsize
    out_itemsize = jnp.dtype(out_dtype).itemsize

    vmem_limit = _vmem_limit_bytes()
    BB = _pick_batch_block(B)
    # Target encoder block ~= limit/8: leaves room for double buffering, the
    # f32 temporaries inside the kernel, dec/out blocks and the accumulators.
    ST = _pick_seq_tile(S, BB, H, enc_itemsize, vmem_limit // 8)

    grid = (B // BB, S // ST)          # batch (parallel) x seq (reduction)

    cost = pl.CostEstimate(
        flops=4 * S * B * H,           # score mul+add, context mul+add
        transcendentals=S * B,         # exp
        bytes_accessed=(S * B * H * enc_itemsize
                        + B * H * dec_itemsize
                        + B * H * out_itemsize),
    )

    out = pl.pallas_call(
        _dot_attn_kernel,
        out_shape=jax.ShapeDtypeStruct((1, B, H), out_dtype),
        grid_spec=pltpu.PrefetchScalarGridSpec(
            num_scalar_prefetch=0,
            grid=grid,
            in_specs=[
                pl.BlockSpec((1, BB, H), lambda i, s: (0, i, 0)),    # dec
                pl.BlockSpec((ST, BB, H), lambda i, s: (s, i, 0)),   # enc
            ],
            # Output block invariant in the S (reduction) axis.
            out_specs=pl.BlockSpec((1, BB, H), lambda i, s: (0, i, 0)),
            scratch_shapes=[
                pltpu.VMEM((1, BB, 1), jnp.float32),   # running max m
                pltpu.VMEM((1, BB, 1), jnp.float32),   # running denom l
                pltpu.VMEM((1, BB, H), jnp.float32),   # running context acc
            ],
        ),
        compiler_params=pltpu.CompilerParams(
            dimension_semantics=("parallel", "arbitrary"),
            vmem_limit_bytes=vmem_limit,
        ),
        cost_estimate=cost,
    )(decoder_hidden, encoder_outputs)

    return out                                           # (1, B, H)


def _reference(decoder_hidden, encoder_outputs):
    enc = jnp.transpose(encoder_outputs, (1, 0, 2))      # (B, S, H)
    dec = jnp.transpose(decoder_hidden, (1, 0, 2))       # (B, 1, H)
    s = jnp.sum(enc * dec, axis=2)                       # (B, S)
    p = jax.nn.softmax(s, axis=1)                        # (B, S)
    ctx = jnp.sum(p[:, :, None] * enc, axis=1)           # (B, H)
    return ctx[None, :, :]                               # (1, B, H)


if __name__ == "__main__":
    B, S, H = 2, 8, 32
    key = jax.random.PRNGKey(0)
    k_dec, k_enc = jax.random.split(key, 2)

    decoder_hidden = jax.random.normal(k_dec, (1, B, H), dtype=jnp.float32)
    encoder_outputs = jax.random.normal(k_enc, (S, B, H), dtype=jnp.float32)

    out = dot_attn(decoder_hidden, encoder_outputs)
    out = jax.block_until_ready(out)

    ref = _reference(decoder_hidden, encoder_outputs)
    assert out.shape == (1, B, H)
    assert out.dtype == ref.dtype
    assert jnp.allclose(out, ref, atol=1e-5, rtol=1e-5)

    print("KERNEL_OK")
</pallas_src>

<mosaic_0001>
module attributes {stable_mosaic.version = 11 : i64} {
  func.func @_dot_attn_kernel(%arg0: i32, %arg1: i32, %arg2: memref<1x2x32xf32, #tpu.memory_space<vmem>>, %arg3: memref<8x2x32xf32, #tpu.memory_space<vmem>>, %arg4: memref<1x2x32xf32, #tpu.memory_space<vmem>>, %arg5: memref<1x2x1xf32, #tpu.memory_space<vmem>>, %arg6: memref<1x2x1xf32, #tpu.memory_space<vmem>>, %arg7: memref<1x2x32xf32, #tpu.memory_space<vmem>>) attributes {dimension_semantics = [#tpu.dimension_semantics<parallel>, #tpu.dimension_semantics<arbitrary>], iteration_bounds = array<i64: 1, 1>, scalar_prefetch = 0 : i64, scratch_operands = 3 : i64, tpu.core_type = #tpu.core_type<tc>, window_params = [{transform_indices = @transform_0, window_bounds = array<i64: 1, 2, 32>}, {transform_indices = @transform_1, window_bounds = array<i64: 8, 2, 32>}, {transform_indices = @transform_2, window_bounds = array<i64: 1, 2, 32>}]} {
    %c0_i32 = arith.constant 0 : i32
    %0 = arith.cmpi eq, %arg1, %c0_i32 : i32
    %1 = arith.extui %0 : i1 to i32
    %c0_i32_0 = arith.constant 0 : i32
    %2 = arith.cmpi ne, %1, %c0_i32_0 : i32
    scf.if %2 {
      %cst_32 = arith.constant 0xFF800000 : f32
      %38 = vector.broadcast %cst_32 : f32 to vector<1x2x1xf32>
      %c0_33 = arith.constant 0 : index
      %c0_34 = arith.constant 0 : index
      %c0_35 = arith.constant 0 : index
      %39 = vector.load %arg5[%c0_33, %c0_34, %c0_35] : memref<1x2x1xf32, #tpu.memory_space<vmem>>, vector<1x2x1xf32>
      tpu.vector_store %arg5[%c0_33, %c0_34, %c0_35], %38 {strides = array<i32>} : memref<1x2x1xf32, #tpu.memory_space<vmem>>, vector<1x2x1xf32>,
      %cst_36 = arith.constant 0.000000e+00 : f32
      %40 = vector.broadcast %cst_36 : f32 to vector<1x2x1xf32>
      %c0_37 = arith.constant 0 : index
      %c0_38 = arith.constant 0 : index
      %c0_39 = arith.constant 0 : index
      %41 = vector.load %arg6[%c0_37, %c0_38, %c0_39] : memref<1x2x1xf32, #tpu.memory_space<vmem>>, vector<1x2x1xf32>
      tpu.vector_store %arg6[%c0_37, %c0_38, %c0_39], %40 {strides = array<i32>} : memref<1x2x1xf32, #tpu.memory_space<vmem>>, vector<1x2x1xf32>,
      %cst_40 = arith.constant 0.000000e+00 : f32
      %42 = vector.broadcast %cst_40 : f32 to vector<1x2x32xf32>
      %c0_41 = arith.constant 0 : index
      %c0_42 = arith.constant 0 : index
      %c0_43 = arith.constant 0 : index
      %43 = vector.load %arg7[%c0_41, %c0_42, %c0_43] : memref<1x2x32xf32, #tpu.memory_space<vmem>>, vector<1x2x32xf32>
      tpu.vector_store %arg7[%c0_41, %c0_42, %c0_43], %42 {strides = array<i32>} : memref<1x2x32xf32, #tpu.memory_space<vmem>>, vector<1x2x32xf32>,
    } else {
    }
    %c0 = arith.constant 0 : index
    %c0_1 = arith.constant 0 : index
    %c0_2 = arith.constant 0 : index
    %3 = vector.load %arg2[%c0, %c0_1, %c0_2] : memref<1x2x32xf32, #tpu.memory_space<vmem>>, vector<1x2x32xf32>
    %c0_3 = arith.constant 0 : index
    %c0_4 = arith.constant 0 : index
    %c0_5 = arith.constant 0 : index
    %4 = vector.load %arg3[%c0_3, %c0_4, %c0_5] : memref<8x2x32xf32, #tpu.memory_space<vmem>>, vector<8x2x32xf32>
    %5 = vector.broadcast %3 : vector<1x2x32xf32> to vector<8x2x32xf32>
    %6 = arith.mulf %4, %5 : vector<8x2x32xf32>
    %cst = arith.constant dense<0.000000e+00> : vector<8x2xf32>
    %7 = vector.multi_reduction <add>, %6, %cst [2] : vector<8x2x32xf32> to vector<8x2xf32>
    %8 = vector.shape_cast %7 : vector<8x2xf32> to vector<8x2x1xf32>
    %c0_6 = arith.constant 0 : index
    %c0_7 = arith.constant 0 : index
    %c0_8 = arith.constant 0 : index
    %9 = vector.load %arg5[%c0_6, %c0_7, %c0_8] : memref<1x2x1xf32, #tpu.memory_space<vmem>>, vector<1x2x1xf32>
    %cst_9 = arith.constant dense<0xFF800000> : vector<2x1xf32>
    %10 = vector.multi_reduction <maximumf>, %8, %cst_9 [0] : vector<8x2x1xf32> to vector<2x1xf32>
    %11 = vector.shape_cast %10 : vector<2x1xf32> to vector<1x2x1xf32>
    %12 = arith.maximumf %9, %11 : vector<1x2x1xf32>
    %13 = arith.subf %9, %12 : vector<1x2x1xf32>
    %14 = math.exp %13 : vector<1x2x1xf32>
    %15 = vector.broadcast %12 : vector<1x2x1xf32> to vector<8x2x1xf32>
    %16 = arith.subf %8, %15 : vector<8x2x1xf32>
    %17 = math.exp %16 : vector<8x2x1xf32>
    %c0_10 = arith.constant 0 : index
    %c0_11 = arith.constant 0 : index
    %c0_12 = arith.constant 0 : index
    %18 = vector.load %arg6[%c0_10, %c0_11, %c0_12] : memref<1x2x1xf32, #tpu.memory_space<vmem>>, vector<1x2x1xf32>
    %19 = arith.mulf %14, %18 : vector<1x2x1xf32>
    %cst_13 = arith.constant dense<0.000000e+00> : vector<2x1xf32>
    %20 = vector.multi_reduction <add>, %17, %cst_13 [0] : vector<8x2x1xf32> to vector<2x1xf32>
    %21 = vector.shape_cast %20 : vector<2x1xf32> to vector<1x2x1xf32>
    %22 = arith.addf %19, %21 : vector<1x2x1xf32>
    %c0_14 = arith.constant 0 : index
    %c0_15 = arith.constant 0 : index
    %c0_16 = arith.constant 0 : index
    %23 = vector.load %arg6[%c0_14, %c0_15, %c0_16] : memref<1x2x1xf32, #tpu.memory_space<vmem>>, vector<1x2x1xf32>
    tpu.vector_store %arg6[%c0_14, %c0_15, %c0_16], %22 {strides = array<i32>} : memref<1x2x1xf32, #tpu.memory_space<vmem>>, vector<1x2x1xf32>,
    %c0_17 = arith.constant 0 : index
    %c0_18 = arith.constant 0 : index
    %c0_19 = arith.constant 0 : index
    %24 = vector.load %arg7[%c0_17, %c0_18, %c0_19] : memref<1x2x32xf32, #tpu.memory_space<vmem>>, vector<1x2x32xf32>
    %25 = vector.broadcast %14 : vector<1x2x1xf32> to vector<1x2x32xf32>
    %26 = arith.mulf %25, %24 : vector<1x2x32xf32>
    %c0_20 = arith.constant 0 : index
    %c0_21 = arith.constant 0 : index
    %c0_22 = arith.constant 0 : index
    %27 = vector.load %arg3[%c0_20, %c0_21, %c0_22] : memref<8x2x32xf32, #tpu.memory_space<vmem>>, vector<8x2x32xf32>
    %28 = vector.broadcast %17 : vector<8x2x1xf32> to vector<8x2x32xf32>
    %29 = arith.mulf %28, %27 : vector<8x2x32xf32>
    %cst_23 = arith.constant dense<0.000000e+00> : vector<2x32xf32>
    %30 = vector.multi_reduction <add>, %29, %cst_23 [0] : vector<8x2x32xf32> to vector<2x32xf32>
    %31 = vector.shape_cast %30 : vector<2x32xf32> to vector<1x2x32xf32>
    %32 = arith.addf %26, %31 : vector<1x2x32xf32>
    %c0_24 = arith.constant 0 : index
    %c0_25 = arith.constant 0 : index
    %c0_26 = arith.constant 0 : index
    %33 = vector.load %arg7[%c0_24, %c0_25, %c0_26] : memref<1x2x32xf32, #tpu.memory_space<vmem>>, vector<1x2x32xf32>
    tpu.vector_store %arg7[%c0_24, %c0_25, %c0_26], %32 {strides = array<i32>} : memref<1x2x32xf32, #tpu.memory_space<vmem>>, vector<1x2x32xf32>,
    %c0_27 = arith.constant 0 : index
    %c0_28 = arith.constant 0 : index
    %c0_29 = arith.constant 0 : index
    %34 = vector.load %arg5[%c0_27, %c0_28, %c0_29] : memref<1x2x1xf32, #tpu.memory_space<vmem>>, vector<1x2x1xf32>
    tpu.vector_store %arg5[%c0_27, %c0_28, %c0_29], %12 {strides = array<i32>} : memref<1x2x1xf32, #tpu.memory_space<vmem>>, vector<1x2x1xf32>,
    %c0_i32_30 = arith.constant 0 : i32
    %35 = arith.cmpi eq, %arg1, %c0_i32_30 : i32
    %36 = arith.extui %35 : i1 to i32
    %c0_i32_31 = arith.constant 0 : i32
    %37 = arith.cmpi ne, %36, %c0_i32_31 : i32
    scf.if %37 {
      %c0_32 = arith.constant 0 : index
      %c0_33 = arith.constant 0 : index
      %c0_34 = arith.constant 0 : index
      %38 = vector.load %arg7[%c0_32, %c0_33, %c0_34] : memref<1x2x32xf32, #tpu.memory_space<vmem>>, vector<1x2x32xf32>
      %c0_35 = arith.constant 0 : index
      %c0_36 = arith.constant 0 : index
      %c0_37 = arith.constant 0 : index
      %39 = vector.load %arg6[%c0_35, %c0_36, %c0_37] : memref<1x2x1xf32, #tpu.memory_space<vmem>>, vector<1x2x1xf32>
      %40 = vector.broadcast %39 : vector<1x2x1xf32> to vector<1x2x32xf32>
      %41 = arith.divf %38, %40 : vector<1x2x32xf32>
      %c0_38 = arith.constant 0 : index
      %c0_39 = arith.constant 0 : index
      %c0_40 = arith.constant 0 : index
      %42 = vector.load %arg4[%c0_38, %c0_39, %c0_40] : memref<1x2x32xf32, #tpu.memory_space<vmem>>, vector<1x2x32xf32>
      tpu.vector_store %arg4[%c0_38, %c0_39, %c0_40], %41 {strides = array<i32>} : memref<1x2x32xf32, #tpu.memory_space<vmem>>, vector<1x2x32xf32>,
    } else {
    }
    return
  }
  func.func @transform_0(%arg0: i32, %arg1: i32) -> (i32, i32, i32) {
    %c0_i32 = arith.constant 0 : i32
    %c0_i32_0 = arith.constant 0 : i32
    %c0_i32_1 = arith.constant 0 : i32
    return %c0_i32, %arg0, %c0_i32_0 : i32, i32, i32
  }
  func.func @transform_1(%arg0: i32, %arg1: i32) -> (i32, i32, i32) {
    %c0_i32 = arith.constant 0 : i32
    %c0_i32_0 = arith.constant 0 : i32
    return %arg1, %arg0, %c0_i32 : i32, i32, i32
  }
  func.func @transform_2(%arg0: i32, %arg1: i32) -> (i32, i32, i32) {
    %c0_i32 = arith.constant 0 : i32
    %c0_i32_0 = arith.constant 0 : i32
    %c0_i32_1 = arith.constant 0 : i32
    return %c0_i32, %arg0, %c0_i32_0 : i32, i32, i32
  }
}

</mosaic_0001>

<bundles_post_ra>
// kernel: tpu_custom_call.1
= control target key start
LH: loop header
LB: loop body
LE: loop exit
PB: predicated region body
PF: predicated region fallthrough
CT: control target
= control target key end

     0   :  { %7 = vsyncpa [#allocation6], 0  ;;  %s423_s0 = inlined_call_operand.hbm [shape: f32[1,2,32], index: 0, kind: input, shape index: {}]   ;;  %s424_s1 = inlined_call_operand.hbm [shape: f32[8,2,32], index: 1, kind: input, shape index: {}]   ;;  %s425_s2 = inlined_call_operand.hbm [shape: f32[1,2,32], index: 2, kind: output, shape index: {}]  }
   0x1   :  { %8 = vsyncpa [#allocation9], 0 }
   0x2   :  { %9 = vsyncpa [#allocation7], 0  ;;  %s360_s9 = smov [#allocation5]   ;;  %s361_s11 = smov [#allocation8]  }
   0x3   :  { %s16_s10 = sshll.u32 %s360_s9, 4  ;;  %s25_s12 = sshll.u32 %s361_s11, 4  ;;  %s17_s10 = int_to_ptr.vmem [resolvable:$true] %s16_s10  ;;  %s26_s12 = int_to_ptr.vmem [resolvable:$true] %s25_s12 }
   0x4   :  { %s302_s13 = scalar_lea.vmem %s17_s10, 32  ;;  %p307_p1 = scmp.lt.s32.totalorder %s17_s10, %s17_s10 }
   0x5   :  { %p303_p0 = scmp.ne.s32.totalorder %s17_s10, %s302_s13  ;;  %p308_p2 = scmp.lt.s32.totalorder %s302_s13, %s302_s13 }
   0x7   :  { %p309_p3 = por %p308_p2, %p307_p1 }
   0x9   :  { %p310_p4 = pnand %p309_p3, %p303_p0 }
   0xb   :  { %313 = shalt.err (!%p310_p4)
}
   0xc   :  { %19 = dma.hbm_to_vmem [thread:$0]  %s423_s0, 32, %s17_s10, [#allocation6]  }
   0xd   :  { %s322_s16 = scalar_lea.vmem %s26_s12, 256  ;;  %p327_p6 = scmp.lt.s32.totalorder %s26_s12, %s26_s12 }
   0xe   :  { %p323_p5 = scmp.ne.s32.totalorder %s26_s12, %s322_s16  ;;  %p328_p7 = scmp.lt.s32.totalorder %s322_s16, %s322_s16 }
  0x10   :  { %p329_p8 = por %p328_p7, %p327_p6 }
  0x12   :  { %p330_p9 = pnand %p329_p8, %p323_p5 }
  0x14   :  { %333 = shalt.err (!%p330_p9)
}
  0x15   :  { %s362_s17 = smov 32   ;;  %s363_s18 = smov 2  }
  0x16   :  { %31 = dma.hbm_to_vmem [thread:$0]  %s424_s1, 256, %s26_s12, [#allocation9], %s362_s17, %s362_s17, %s363_s18  }
  0x17   :  { %354 = dma.done.wait [#allocation6], 32  }
  0x18   :  { %355 = vsyncadd [#allocation6], 4294967264 }
  0x19   :  { %356 = dma.done.wait [#allocation9], 256  }
  0x1a   :  { %357 = vsyncadd [#allocation9], 4294967040  ;;  %vm45_vm0 = vcmask 254976   ;;  %v47_v0 = vld [vmem:[#allocation5] sm:$0x3]  ;;  %vm42_vm1 = vcmask 1024  }
  0x1b   :  { %v50_v1 = vld [vmem:[#allocation8 + $0x4] sm:$0x3]  ;;  %v48_v2 = vld [vmem:[#allocation8] sm:$0x3]  ;;  %v51_v5 = vld [vmem:[#allocation8 + $0x6] sm:$0x3] }
  0x1c   :  { %v58_v3 = vmul.f32 %v50_v1, %v47_v0  ;;  %v56_v4 = vmul.f32 %v48_v2, %v47_v0  ;;  %v49_v6 = vld [vmem:[#allocation8 + $0x2] sm:$0x3]  ;;  %v59_v7 = vmul.f32 %v51_v5, %v47_v0  ;;  %v53_v9 = vld [vmem:[#allocation8 + $0xa] sm:$0x3]  ;;  %v52_v10 = vld [vmem:[#allocation8 + $0x8] sm:$0x3] }
  0x1d   :  { %v57_v8 = vmul.f32 %v49_v6, %v47_v0  ;;  %v61_v15 = vmul.f32 %v53_v9, %v47_v0  ;;  %v60_v16 = vmul.f32 %v52_v10, %v47_v0  ;;  %v55_v17 = vld [vmem:[#allocation8 + $0xe] sm:$0x3]  ;;  %v54_v18 = vld [vmem:[#allocation8 + $0xc] sm:$0x3]  ;;  %v364_v25 = vmov -inf   ;;  %s367_s0 = smov [#allocation10]  }
  0x1e   :  { %v71_v11 = vsel %vm45_vm0, %v58_v3, 0.0  ;;  %v65_v12 = vsel %vm45_vm0, %v56_v4, 0.0  ;;  %v74_v13 = vsel %vm45_vm0, %v59_v7, 0.0  ;;  %v63_v21 = vmul.f32 %v55_v17, %v47_v0  ;;  %43 = vst.msk [vmem:[#allocation2] sm:$0x3] %vm42_vm1, %v364_v25  ;;  %s254_s1 = sshll.u32 %s367_s0, 4  ;;  %s255_s1 = int_to_ptr.vmem [resolvable:$true] %s254_s1 }
  0x1f   :  { %72 = vadd.xlane.f32.xlu1 %v71_v11  ;;  %66 = vadd.xlane.f32.xlu0 %v65_v12  ;;  %v68_v14 = vsel %vm45_vm0, %v57_v8, 0.0  ;;  %v80_v19 = vsel %vm45_vm0, %v61_v15, 0.0  ;;  %v77_v20 = vsel %vm45_vm0, %v60_v16, 0.0  ;;  %v62_v22 = vmul.f32 %v54_v18, %v47_v0  ;;  %s334_s21 = scalar_lea.vmem %s255_s1, 32  ;;  %p339_p11 = scmp.lt.s32.totalorder %s255_s1, %s255_s1 }
  0x20   :  { %v86_v23 = vsel %vm45_vm0, %v63_v21, 0.0  ;;  %v365_v26 = vmov 0.0   ;;  %v366_v27 = vmov 0   ;;  %vm90_vm2 = vcmask 1041408   ;;  %p335_p10 = scmp.ne.s32.totalorder %s255_s1, %s334_s21  ;;  %p340_p12 = scmp.lt.s32.totalorder %s334_s21, %s334_s21 }
  0x21   :  { %v83_v24 = vsel %vm45_vm0, %v62_v22, 0.0  ;;  %44 = vst.msk [vmem:[#allocation3] sm:$0x3] %vm42_vm1, %v365_v26  ;;  %273 = vset.pattern.permute.xlu1 %v366_v27  ;;  %272 = vset.pattern.permute.xlu0 %v366_v27 }
  0x22   :  { %46 = vst.msk [vmem:[#allocation4] sm:$0x3] %vm45_vm0, %v365_v26  ;;  %p341_p13 = por %p340_p12, %p339_p11 }
  0x23   :  { %75 = vadd.xlane.f32.xlu1 %v74_v13  ;;  %69 = vadd.xlane.f32.xlu0 %v68_v14 }
  0x24   :  { %p342_p0 = pnand %p341_p13, %p335_p10 }
  0x25   :  { %v89_v50 = vld [vmem:[#allocation2] sm:$0x3] }
  0x27   :  { %81 = vadd.xlane.f32.xlu1 %v80_v19  ;;  %78 = vadd.xlane.f32.xlu0 %v77_v20 }
  0x28   :  { %v134_v27 = vld [vmem:[#allocation3] sm:$0x3] }
  0x2b   :  { %87 = vadd.xlane.f32.xlu1 %v86_v23  ;;  %84 = vadd.xlane.f32.xlu0 %v83_v24 }
  0xa8   :  { %v73_v28 = vpop.xlane.xlu1 %72  ;;  %v67_v29 = vpop.xlane.xlu0 %66 }
  0xa9   :  { %v91_v36 = vsel %vm90_vm2, %v67_v29, -inf  ;;  %v93_v42 = vsel %vm90_vm2, %v73_v28, -inf }
  0xac   :  { %v76_v30 = vpop.xlane.xlu1 %75  ;;  %v70_v31 = vpop.xlane.xlu0 %69 }
  0xad   :  { %v92_v37 = vsel %vm90_vm2, %v70_v31, -inf  ;;  %v94_v43 = vsel %vm90_vm2, %v76_v30, -inf }
  0xb0   :  { %v82_v32 = vpop.xlane.xlu1 %81  ;;  %v79_v33 = vpop.xlane.xlu0 %78 }
  0xb1   :  { %v97_v34 = vsel %vm90_vm2, %v82_v32, -inf  ;;  %v95_v35 = vsel %vm90_vm2, %v79_v33, -inf }
  0xb2   :  { %v98_v38 = vmax.f32 %v92_v37, %v97_v34  ;;  %v96_v39 = vmax.f32 %v91_v36, %v95_v35  ;;  %v162_v37 = vld [vmem:[#allocation8 + $0x2] sm:$0x3] }
  0xb4   :  { %v88_v40 = vpop.xlane.xlu1 %87  ;;  %v85_v41 = vpop.xlane.xlu0 %84  ;;  %v103_v48 = vmax.f32 %v96_v39, %v98_v38  ;;  %v161_v38 = vld [vmem:[#allocation8] sm:$0x3] }
  0xb5   :  { %v101_v44 = vsel %vm90_vm2, %v88_v40, -inf  ;;  %v99_v45 = vsel %vm90_vm2, %v85_v41, -inf }
  0xb6   :  { %v102_v46 = vmax.f32 %v94_v43, %v101_v44  ;;  %v100_v47 = vmax.f32 %v93_v42, %v99_v45  ;;  %v164_v44 = vld [vmem:[#allocation8 + $0x6] sm:$0x3] }
  0xb8   :  { %v104_v49 = vmax.f32 %v100_v47, %v102_v46  ;;  %v165_v46 = vld [vmem:[#allocation8 + $0x8] sm:$0x3] }
  0xba   :  { %v105_v51 = vmax.f32 %v103_v48, %v104_v49 }
  0xbc   :  { %v106_v52 = vmax.f32 %v89_v50, %v105_v51  ;;  %v166_v51 = vld [vmem:[#allocation8 + $0xa] sm:$0x3] }
  0xbe   :  { %v110_v53 = vsub.f32 %v67_v29, %v106_v52  ;;  %v111_v54 = vsub.f32 %v70_v31, %v106_v52  ;;  %v112_v55 = vsub.f32 %v73_v28, %v106_v52  ;;  %234 = vst.msk [vmem:[#allocation2] sm:$0x3] %vm42_vm1, %v106_v52  ;;  %v107_v56 = vsub.f32 %v89_v50, %v106_v52 }
  0xbf   :  { %v113_v57 = vsub.f32 %v76_v30, %v106_v52  ;;  %v114_v58 = vsub.f32 %v79_v33, %v106_v52  ;;  %v115_v62 = vsub.f32 %v82_v32, %v106_v52  ;;  %v116_v1 = vsub.f32 %v85_v41, %v106_v52 }
  0xc0   :  { %v118_v59 = vmul.f32 1.442695, %v110_v53  ;;  %v120_v60 = vmul.f32 1.442695, %v111_v54  ;;  %v122_v61 = vmul.f32 1.442695, %v112_v55  ;;  %v117_v3 = vsub.f32 %v88_v40, %v106_v52 }
  0xc1   :  { %v124_v63 = vmul.f32 1.442695, %v113_v57  ;;  %v108_v0 = vmul.f32 1.442695, %v107_v56  ;;  %v126_v2 = vmul.f32 1.442695, %v114_v58 }
  0xc2   :  { %274 = vpow2.f32 %v118_v59  ;;  %v128_v4 = vmul.f32 1.442695, %v115_v62  ;;  %v130_v5 = vmul.f32 1.442695, %v116_v1  ;;  %v132_v6 = vmul.f32 1.442695, %v117_v3 }
  0xc3   :  { %276 = vpow2.f32 %v120_v60  ;;  %v163_v40 = vld [vmem:[#allocation8 + $0x4] sm:$0x3]  ;;  %v167_v59 = vld [vmem:[#allocation8 + $0xc] sm:$0x3] }
  0xc4   :  { %278 = vpow2.f32 %v122_v61 }
  0xc5   :  { %280 = vpow2.f32 %v124_v63 }
  0xc6   :  { %282 = vpow2.f32 %v108_v0 }
  0xc7   :  { %284 = vpow2.f32 %v126_v2  ;;  %v168_v2 = vld [vmem:[#allocation8 + $0xe] sm:$0x3] }
  0xc8   :  { %286 = vpow2.f32 %v128_v4 }
  0xc9   :  { %288 = vpow2.f32 %v130_v5 }
  0xca   :  { %290 = vpow2.f32 %v132_v6  ;;  %v154_v6 = vld [vmem:[#allocation4] sm:$0x3] }
  0xcf   :  { %v275_v7 = vpop.eup %274 }
  0xd0   :  { %v277_v8 = vpop.eup %276  ;;  %v137_v9 = vsel %vm42_vm1, %v275_v7, 0.0  ;;  %171 = vperm.xlu0 %272, %v275_v7  }
  0xd1   :  { %v279_v10 = vpop.eup %278  ;;  %v138_v11 = vsel %vm42_vm1, %v277_v8, 0.0  ;;  %176 = vperm.xlu1 %273, %v277_v8  }
  0xd2   :  { %v281_v12 = vpop.eup %280  ;;  %v139_v13 = vadd.f32 %v138_v11, %v137_v9  ;;  %v140_v15 = vsel %vm42_vm1, %v279_v10, 0.0 }
  0xd3   :  { %v283_v14 = vpop.eup %282  ;;  %v142_v18 = vsel %vm42_vm1, %v281_v12, 0.0 }
  0xd4   :  { %v285_v16 = vpop.eup %284  ;;  %v141_v17 = vadd.f32 %v140_v15, %v139_v13  ;;  %157 = vperm.xlu0 %272, %v283_v14   ;;  %v135_v31 = vmul.f32 %v283_v14, %v134_v27 }
  0xd5   :  { %181 = vperm.xlu1 %273, %v279_v10   ;;  %v287_v19 = vpop.eup %286  ;;  %v144_v21 = vsel %vm42_vm1, %v285_v16, 0.0 }
  0xd6   :  { %v143_v20 = vadd.f32 %v142_v18, %v141_v17  ;;  %v289_v22 = vpop.eup %288  ;;  %v146_v24 = vsel %vm42_vm1, %v287_v19, 0.0 }
  0xd7   :  { %v291_v25 = vpop.eup %290  ;;  %v148_v28 = vsel %vm42_vm1, %v289_v22, 0.0 }
  0xd8   :  { %v145_v23 = vadd.f32 %v144_v21, %v143_v20  ;;  %v150_v30 = vsel %vm42_vm1, %v291_v25, 0.0 }
  0xd9   :  { %186 = vperm.xlu1 %273, %v281_v12  }
  0xda   :  { %v147_v26 = vadd.f32 %v146_v24, %v145_v23 }
  0xdc   :  { %v149_v29 = vadd.f32 %v148_v28, %v147_v26 }
  0xdd   :  { %191 = vperm.xlu1 %273, %v285_v16  }
  0xde   :  { %v151_v32 = vadd.f32 %v150_v30, %v149_v29 }
  0xe0   :  { %v152_v33 = vadd.f32 %v151_v32, %v135_v31 }
  0xe1   :  { %196 = vperm.xlu1 %273, %v287_v19  }
  0xe2   :  { %153 = vst.msk [vmem:[#allocation3] sm:$0x3] %vm42_vm1, %v152_v33 }
  0xe5   :  { %201 = vperm.xlu1 %273, %v289_v22  }
  0xe9   :  { %206 = vperm.xlu1 %273, %v291_v25   ;;  %v239_v34 = vld [vmem:[#allocation3] sm:$0x3] }
  0xed   :  { %242 = vperm.xlu1 %273, %v239_v34  }
 0x14b   :  { %v172_v39 = vpop.permute.xlu0 %171 }
 0x14c   :  { %v177_v35 = vpop.permute.xlu1 %176  ;;  %v209_v43 = vmul.f32 %v172_v39, %v161_v38 }
 0x14d   :  { %v210_v42 = vmul.f32 %v177_v35, %v162_v37 }
 0x14e   :  { %v217_v49 = vsel %vm45_vm0, %v209_v43, 0.0 }
 0x14f   :  { %v218_v48 = vsel %vm45_vm0, %v210_v42, 0.0  ;;  %v158_v7 = vpop.permute.xlu0 %157 }
 0x150   :  { %v182_v36 = vpop.permute.xlu1 %181  ;;  %v219_v54 = vadd.f32 %v218_v48, %v217_v49  ;;  %v160_v11 = vmul.f32 %v158_v7, %v154_v6 }
 0x151   :  { %v211_v45 = vmul.f32 %v182_v36, %v163_v40 }
 0x153   :  { %v220_v52 = vsel %vm45_vm0, %v211_v45, 0.0 }
 0x154   :  { %v187_v41 = vpop.permute.xlu1 %186  ;;  %v221_v58 = vadd.f32 %v220_v52, %v219_v54 }
 0x155   :  { %v212_v50 = vmul.f32 %v187_v41, %v164_v44 }
 0x157   :  { %v222_v56 = vsel %vm45_vm0, %v212_v50, 0.0 }
 0x158   :  { %v192_v47 = vpop.permute.xlu1 %191  ;;  %v223_v61 = vadd.f32 %v222_v56, %v221_v58 }
 0x159   :  { %v213_v53 = vmul.f32 %v192_v47, %v165_v46 }
 0x15b   :  { %v224_v60 = vsel %vm45_vm0, %v213_v53, 0.0 }
 0x15c   :  { %v197_v55 = vpop.permute.xlu1 %196  ;;  %v225_v1 = vadd.f32 %v224_v60, %v223_v61 }
 0x15d   :  { %v214_v57 = vmul.f32 %v197_v55, %v166_v51 }
 0x15f   :  { %v226_v63 = vsel %vm45_vm0, %v214_v57, 0.0 }
 0x160   :  { %v202_v62 = vpop.permute.xlu1 %201  ;;  %v227_v4 = vadd.f32 %v226_v63, %v225_v1 }
 0x161   :  { %v215_v0 = vmul.f32 %v202_v62, %v167_v59 }
 0x163   :  { %v228_v3 = vsel %vm45_vm0, %v215_v0, 0.0 }
 0x164   :  { %v207_v5 = vpop.permute.xlu1 %206  ;;  %v229_v9 = vadd.f32 %v228_v3, %v227_v4 }
 0x165   :  { %v216_v8 = vmul.f32 %v207_v5, %v168_v2 }
 0x167   :  { %v230_v10 = vsel %vm45_vm0, %v216_v8, 0.0 }
 0x168   :  { %v231_v12 = vadd.f32 %v230_v10, %v229_v9  ;;  %v243_v13 = vpop.permute.xlu1 %242 }
 0x169   :  { %292 = vrcp.f32 %v243_v13 }
 0x16a   :  { %v232_v14 = vadd.f32 %v231_v12, %v160_v11 }
 0x16c   :  { %233 = vst.msk [vmem:[#allocation4] sm:$0x3] %vm45_vm0, %v232_v14 }
 0x173   :  { %v238_v16 = vld [vmem:[#allocation4] sm:$0x3] }
 0x176   :  { %v293_v15 = vpop.eup %292 }
 0x177   :  { %v246_v17 = vmul.f32 %v293_v15, %v238_v16 }
 0x179   :  { %247 = vst.msk [vmem:[#allocation10] sm:$0x3] %vm45_vm0, %v246_v17 }
 0x17a   :  { %345 = shalt.err (!%p342_p0)
}
 0x17b   :  { %257 = dma.vmem_to_hbm [thread:$0]  %s255_s1, 32, %s425_s2, [#allocation7]  }
 0x17c   :  { %358 = dma.done.wait [#allocation7], 32  }
 0x17d   :  { %359 = vsyncadd [#allocation7], 4294967264 }
 0x17e   :  { %261 = vsyncpa [#allocation6], 1 }
 0x17f   :  { %262 = vsyncpa [#allocation9], 1 }
 0x180   :  { %263 = vsyncpa [#allocation7], 1 }

</bundles_post_ra>
